<compile_context>
chip_gen: v5e
topology: v5e:2x2
jax: 0.10.0
libtpu: 0.0.40
codegen_flags: <defaults>
</compile_context>

<pallas_src>
import functools

import numpy as np
import jax
import jax.numpy as jnp
from jax.experimental import pallas as pl
from jax.experimental.pallas import tpu as pltpu

# ------------------------- config (the module's config dict) -----------------
N_FFT = 128      # config['n_fft']
HOP = 32         # config['hop_length']
WIN_LEN = 128    # config['win_len']


def _round_up(x, m):
    return (x + m - 1) // m * m


def _hann_periodic(win_len):
    # == scipy.signal.get_window('hann', win_len, fftbins=True)
    n = np.arange(win_len)
    return 0.5 - 0.5 * np.cos(2.0 * np.pi * n / win_len)


def _make_constants(n_fft, hop, win_len, n_frames, G, nc):
    """Fused per-phase (windowed DFT -> inverse DFT -> OLA shift) matrices and
    the reciprocal istft envelope laid out in output-array coordinates."""
    K = n_fft // 2 + 1
    pad = n_fft // 2
    R = n_fft // hop

    window = np.zeros(n_fft, np.float64)
    off = (n_fft - win_len) // 2
    window[off:off + win_len] = _hann_periodic(win_len)

    n = np.arange(n_fft)[:, None].astype(np.float64)
    k = np.arange(K)[None, :].astype(np.float64)
    ang = 2.0 * np.pi * n * k / n_fft                               # (n_fft, K)

    # forward rfft basis with analysis window folded in: [w*cos | -w*sin]
    fwd = np.concatenate([window[:, None] * np.cos(ang),
                          -window[:, None] * np.sin(ang)], axis=1)  # (n_fft, 2K)
    # inverse irfft basis with synthesis window folded in
    c = np.full(K, 2.0)
    c[0] = 1.0
    if n_fft % 2 == 0:
        c[-1] = 1.0
    inv_re = (c[:, None] * np.cos(ang.T) / n_fft) * window[None, :]  # (K, n_fft)
    inv_im = (-c[:, None] * np.sin(ang.T) / n_fft) * window[None, :]
    inv = np.concatenate([inv_re, inv_im], axis=0)                   # (2K, n_fft)

    # combined STFT->ISTFT frame operator (== diag(window^2) up to rounding)
    comb = fwd @ inv                                                 # (n_fft, n_fft)

    # per-phase matrices: columns [0,128) -> current 128-sample acc row,
    # columns [128,256) -> carry into the next row; the p*hop lane shift is
    # baked in so the kernel's OLA is two plain contiguous slice-adds.
    mats = np.zeros((R, n_fft, 2 * n_fft), np.float64)
    for p in range(R):
        mats[p][:, p * hop:p * hop + n_fft] = comb

    # window^2 overlap-add envelope (what torch.istft divides by), inverted and
    # placed at the output-array offset (G+1)*128 used by the streamed flush.
    t_out = hop * (n_frames - 1)
    L_ola = n_fft + hop * (n_frames - 1)
    env = np.zeros(L_ola, np.float64)
    w2 = window * window
    for f in range(n_frames):
        env[f * hop:f * hop + n_fft] += w2
    seg = env[pad:pad + t_out]
    # NOTE: zeroing near-zero envelope bins differs from torch.istft's assert;
    # harmless here because COLA holds over the trimmed region.
    inv_env = np.where(seg > 1e-11, 1.0 / np.maximum(seg, 1e-30), 0.0)

    n_rows_out = (nc + 1) * G
    env_flat = np.zeros(n_rows_out * n_fft, np.float64)
    env_flat[(G + 1) * n_fft:(G + 1) * n_fft + t_out] = inv_env
    env_arr = env_flat.reshape(1, n_rows_out, n_fft)

    return mats.astype(np.float32), env_arr.astype(np.float32)


def _revstft_kernel(frames_ref, mats_ref, env_ref, out_ref, acc_ref, *, G):
    c = pl.program_id(1)

    @pl.when(c == 0)
    def _init():
        acc_ref[...] = jnp.zeros_like(acc_ref)

    Bt, R, _, lane = frames_ref.shape
    base = pl.multiple_of(c * G, 8)

    # Four phase groups.  Each: one fused (Bt*G, 128) x (128, 256) bf16 MXU
    # matmul (windowed DFT -> inverse DFT -> phase shift -> [row | carry-row]
    # lane split), then lane-dense slice-adds into the persistent accumulator.
    for p in range(R):
        xg = frames_ref[:, p, :, :].reshape(Bt * G, lane)
        y = jnp.dot(xg, mats_ref[p], preferred_element_type=jnp.float32)
        main = y[:, :lane].reshape(Bt, G, lane)
        acc_ref[:, pl.ds(base, G), :] += main
        if p > 0:  # phase 0 has no spill into the next row
            carry = y[:, lane:].reshape(Bt, G, lane)
            acc_ref[:, pl.ds(base + 1, G), :] += carry

    # Streamed writeback: rows [(c-1)*G, c*G) received their last contribution
    # from chunk c-1 (chunk c only touches rows >= c*G), so flush them now,
    # already divided by the OLA envelope.  Block 0 of the output is a dummy
    # that the wrapper trims away.
    @pl.when(c > 0)
    def _flush():
        prev = pl.multiple_of((c - 1) * G, 8)
        out_ref[...] = acc_ref[:, pl.ds(prev, G), :] * env_ref[...]


def revstft_forward(x, *, batch_tile=None, frame_chunk=None):
    """Forward pass of RevSTFT.  x: (B, T) or (B, 1, T) float audio."""
    x = jnp.asarray(x, jnp.float32)
    if x.ndim == 3 and x.shape[1] == 1:
        x = jnp.squeeze(x, axis=1)
    B, T = x.shape

    n_fft, hop, win_len = N_FFT, HOP, WIN_LEN
    assert n_fft == 128 and n_fft % hop == 0
    pad = n_fft // 2
    assert T > pad, "reflect padding requires T > n_fft//2"
    R = n_fft // hop                                   # frames per 128-lane row
    n_frames = 1 + (T + 2 * pad - n_fft) // hop
    t_out = hop * (n_frames - 1)                       # torch.istft output length

    # batch tile: keep >= 2 blocks on the "parallel" axis whenever B >= 2 so
    # both v7x TensorCores get work; cap at 8 to keep blocks modest.
    if batch_tile is not None:
        Bt = batch_tile
    elif B == 1:
        Bt = 1
    else:
        cap = min(8, B // 2)
        Bt = max(d for d in range(1, cap + 1) if B % d == 0)
    assert B % Bt == 0

    # frame chunk: multiple of 32 so G = Fc/4 rows is sublane(8)-aligned;
    # target ~512 matmul rows for the 256-wide MXUs on v6e/v7x.
    if frame_chunk is None:
        Fc = min(_round_up(n_frames + 3, 32),
                 _round_up(max(32, 512 // Bt), 32))
    else:
        Fc = frame_chunk
    assert Fc % 32 == 0
    G = Fc // R

    total_f = n_frames + 2          # 2 zero frames prepended -> 128-aligned trim
    F_pad = _round_up(total_f + 1, Fc)   # +1 slack so the last flush covers t_out
    nc = F_pad // Fc                # compute chunks
    nch = nc + 1                    # + one zero "flush" chunk at the end

    mats, env_arr = _make_constants(n_fft, hop, win_len, n_frames, G, nc)

    # ---- glue outside the kernel: center reflect-pad + overlapping framing.
    x_pad = jnp.pad(x, ((0, 0), (pad, pad)), mode='reflect')
    idx = np.arange(n_frames)[:, None] * hop + np.arange(n_fft)[None, :]
    frames = x_pad[:, idx]                                    # (B, n_frames, 128)
    frames = jnp.pad(frames, ((0, 0), (2, nch * Fc - 2 - n_frames), (0, 0)))
    # phase-grouped layout: frames[b, chunk*4 + p, g, :] = frame chunk*Fc + 4g + p
    frames = frames.reshape(B, nch, G, R, n_fft).transpose(0, 1, 3, 2, 4)
    frames = frames.reshape(B, nch * R, G, n_fft).astype(jnp.bfloat16)

    n_rows_out = nch * G
    n_acc = nch * G + 8

    # generation-aware VMEM limit (don't claim all of v7x's 64 MiB)
    try:
        vmem_cap = pltpu.get_tpu_info().vmem_capacity_bytes
    except Exception:
        vmem_cap = 128 * 1024 * 1024
    vmem_limit = int(min(vmem_cap // 2, 64 * 1024 * 1024))

    kernel = functools.partial(_revstft_kernel, G=G)

    out3 = pl.pallas_call(
        kernel,
        out_shape=jax.ShapeDtypeStruct((B, n_rows_out, 128), jnp.float32),
        grid_spec=pltpu.PrefetchScalarGridSpec(
            num_scalar_prefetch=0,
            grid=(B // Bt, nch),
            in_specs=[
                pl.BlockSpec((Bt, R, G, n_fft), lambda b, c: (b, c, 0, 0)),
                pl.BlockSpec((R, n_fft, 2 * n_fft), lambda b, c: (0, 0, 0)),
                pl.BlockSpec((1, G, 128), lambda b, c: (0, c, 0)),
            ],
            out_specs=pl.BlockSpec((Bt, G, 128), lambda b, c: (b, c, 0)),
            scratch_shapes=[pltpu.VMEM((Bt, n_acc, 128), jnp.float32)],
        ),
        compiler_params=pltpu.CompilerParams(
            dimension_semantics=("parallel", "arbitrary"),
            vmem_limit_bytes=vmem_limit),
    )(frames, jnp.asarray(mats, jnp.bfloat16), jnp.asarray(env_arr))

    # collapse rows back to a time axis and trim the dummy block + center pad.
    out = out3.reshape(B, n_rows_out * 128)
    return out[:, (G + 1) * 128:(G + 1) * 128 + t_out]


if __name__ == "__main__":
    key = jax.random.PRNGKey(0)
    B, T = 2, 256
    x = jax.random.normal(key, (B, 1, T), dtype=jnp.float32)   # (B, 1, T) like the module

    y = revstft_forward(x)
    y = jax.block_until_ready(y)
    assert y.shape == (B, T) and y.dtype == jnp.float32

    # STFT -> normalize -> ISTFT -> denormalize is a (near-)perfect round trip
    # for a periodic hann window at hop = n_fft/4 (COLA), so the output should
    # reproduce the input.  Tolerance covers the bf16 operands (f32 accum).
    ref = np.asarray(jnp.squeeze(x, 1))
    np.testing.assert_allclose(np.asarray(y), ref, rtol=5e-2, atol=5e-2)

    print("KERNEL_OK")
</pallas_src>

<mosaic_0001>
module attributes {stable_mosaic.version = 11 : i64} {
  func.func @_revstft_kernel(%arg0: i32, %arg1: i32, %arg2: memref<1x4x8x128xbf16, #tpu.memory_space<vmem>>, %arg3: memref<4x128x256xbf16, #tpu.memory_space<vmem>>, %arg4: memref<1x8x128xf32, #tpu.memory_space<vmem>>, %arg5: memref<1x8x128xf32, #tpu.memory_space<vmem>>, %arg6: memref<1x24x128xf32, #tpu.memory_space<vmem>>) attributes {dimension_semantics = [#tpu.dimension_semantics<parallel>, #tpu.dimension_semantics<arbitrary>], iteration_bounds = array<i64: 2, 2>, scalar_prefetch = 0 : i64, scratch_operands = 1 : i64, tpu.core_type = #tpu.core_type<tc>, window_params = [{transform_indices = @transform_0, window_bounds = array<i64: 1, 4, 8, 128>}, {pipeline_mode = #tpu.pipeline_mode<synchronous>, transform_indices = @transform_1, window_bounds = array<i64: 4, 128, 256>}, {transform_indices = @transform_2, window_bounds = array<i64: 1, 8, 128>}, {transform_indices = @transform_3, window_bounds = array<i64: 1, 8, 128>}]} {
    %c0_i32 = arith.constant 0 : i32
    %0 = arith.cmpi eq, %arg1, %c0_i32 : i32
    %1 = arith.extui %0 : i1 to i32
    %c0_i32_0 = arith.constant 0 : i32
    %2 = arith.cmpi ne, %1, %c0_i32_0 : i32
    scf.if %2 {
      %cst_60 = arith.constant 0.000000e+00 : f32
      %84 = vector.broadcast %cst_60 : f32 to vector<1x24x128xf32>
      %c0_61 = arith.constant 0 : index
      %c0_62 = arith.constant 0 : index
      %c0_63 = arith.constant 0 : index
      %85 = vector.load %arg6[%c0_61, %c0_62, %c0_63] : memref<1x24x128xf32, #tpu.memory_space<vmem>>, vector<1x24x128xf32>
      tpu.vector_store %arg6[%c0_61, %c0_62, %c0_63], %84 {strides = array<i32>} : memref<1x24x128xf32, #tpu.memory_space<vmem>>, vector<1x24x128xf32>,
    } else {
    }
    %c8_i32 = arith.constant 8 : i32
    %3 = arith.muli %arg1, %c8_i32 : i32
    %4 = tpu.assume_multiple %3, 8 : i32
    %c0 = arith.constant 0 : index
    %c0_1 = arith.constant 0 : index
    %c0_2 = arith.constant 0 : index
    %c0_3 = arith.constant 0 : index
    %5 = vector.load %arg2[%c0, %c0_1, %c0_2, %c0_3] : memref<1x4x8x128xbf16, #tpu.memory_space<vmem>>, vector<1x1x8x128xbf16>
    %6 = vector.shape_cast %5 : vector<1x1x8x128xbf16> to vector<1x8x128xbf16>
    %7 = vector.shape_cast %6 : vector<1x8x128xbf16> to vector<8x128xbf16>
    %c0_4 = arith.constant 0 : index
    %c0_5 = arith.constant 0 : index
    %c0_6 = arith.constant 0 : index
    %8 = vector.load %arg3[%c0_4, %c0_5, %c0_6] : memref<4x128x256xbf16, #tpu.memory_space<vmem>>, vector<1x128x256xbf16>
    %9 = vector.shape_cast %8 : vector<1x128x256xbf16> to vector<128x256xbf16>
    %cst = arith.constant dense<0.000000e+00> : vector<8x256xf32>
    %10 = tpu.matmul %7, %9, %cst {dimension_numbers = #tpu.dot_dimension_numbers<[1], [0], [0], [1], [0, 0, 1, 1], [], []>} : vector<8x128xbf16>, vector<128x256xbf16>, vector<8x256xf32> -> vector<8x256xf32>
    %11 = vector.extract_strided_slice %10 {offsets = [0, 0], sizes = [8, 128], strides = [1, 1]} : vector<8x256xf32> to vector<8x128xf32>
    %12 = vector.shape_cast %11 : vector<8x128xf32> to vector<1x8x128xf32>
    %c0_7 = arith.constant 0 : index
    %13 = arith.index_cast %4 : i32 to index
    %c0_8 = arith.constant 0 : index
    %14 = vector.load %arg6[%c0_7, %13, %c0_8] : memref<1x24x128xf32, #tpu.memory_space<vmem>>, vector<1x8x128xf32>
    %15 = arith.addf %14, %12 : vector<1x8x128xf32>
    %c0_9 = arith.constant 0 : index
    %16 = arith.index_cast %4 : i32 to index
    %c0_10 = arith.constant 0 : index
    %17 = vector.load %arg6[%c0_9, %16, %c0_10] : memref<1x24x128xf32, #tpu.memory_space<vmem>>, vector<1x8x128xf32>
    tpu.vector_store %arg6[%c0_9, %16, %c0_10], %15 {strides = array<i32>} : memref<1x24x128xf32, #tpu.memory_space<vmem>>, vector<1x8x128xf32>,
    %c0_11 = arith.constant 0 : index
    %c1 = arith.constant 1 : index
    %c0_12 = arith.constant 0 : index
    %c0_13 = arith.constant 0 : index
    %18 = vector.load %arg2[%c0_11, %c1, %c0_12, %c0_13] : memref<1x4x8x128xbf16, #tpu.memory_space<vmem>>, vector<1x1x8x128xbf16>
    %19 = vector.shape_cast %18 : vector<1x1x8x128xbf16> to vector<1x8x128xbf16>
    %20 = vector.shape_cast %19 : vector<1x8x128xbf16> to vector<8x128xbf16>
    %c1_14 = arith.constant 1 : index
    %c0_15 = arith.constant 0 : index
    %c0_16 = arith.constant 0 : index
    %21 = vector.load %arg3[%c1_14, %c0_15, %c0_16] : memref<4x128x256xbf16, #tpu.memory_space<vmem>>, vector<1x128x256xbf16>
    %22 = vector.shape_cast %21 : vector<1x128x256xbf16> to vector<128x256xbf16>
    %cst_17 = arith.constant dense<0.000000e+00> : vector<8x256xf32>
    %23 = tpu.matmul %20, %22, %cst_17 {dimension_numbers = #tpu.dot_dimension_numbers<[1], [0], [0], [1], [0, 0, 1, 1], [], []>} : vector<8x128xbf16>, vector<128x256xbf16>, vector<8x256xf32> -> vector<8x256xf32>
    %24 = vector.extract_strided_slice %23 {offsets = [0, 0], sizes = [8, 128], strides = [1, 1]} : vector<8x256xf32> to vector<8x128xf32>
    %25 = vector.shape_cast %24 : vector<8x128xf32> to vector<1x8x128xf32>
    %c0_18 = arith.constant 0 : index
    %26 = arith.index_cast %4 : i32 to index
    %c0_19 = arith.constant 0 : index
    %27 = vector.load %arg6[%c0_18, %26, %c0_19] : memref<1x24x128xf32, #tpu.memory_space<vmem>>, vector<1x8x128xf32>
    %28 = arith.addf %27, %25 : vector<1x8x128xf32>
    %c0_20 = arith.constant 0 : index
    %29 = arith.index_cast %4 : i32 to index
    %c0_21 = arith.constant 0 : index
    %30 = vector.load %arg6[%c0_20, %29, %c0_21] : memref<1x24x128xf32, #tpu.memory_space<vmem>>, vector<1x8x128xf32>
    tpu.vector_store %arg6[%c0_20, %29, %c0_21], %28 {strides = array<i32>} : memref<1x24x128xf32, #tpu.memory_space<vmem>>, vector<1x8x128xf32>,
    %31 = vector.extract_strided_slice %23 {offsets = [0, 128], sizes = [8, 128], strides = [1, 1]} : vector<8x256xf32> to vector<8x128xf32>
    %32 = vector.shape_cast %31 : vector<8x128xf32> to vector<1x8x128xf32>
    %c1_i32 = arith.constant 1 : i32
    %33 = arith.addi %4, %c1_i32 : i32
    %c0_22 = arith.constant 0 : index
    %34 = arith.index_cast %33 : i32 to index
    %c0_23 = arith.constant 0 : index
    %35 = vector.load %arg6[%c0_22, %34, %c0_23] : memref<1x24x128xf32, #tpu.memory_space<vmem>>, vector<1x8x128xf32>
    %36 = arith.addf %35, %32 : vector<1x8x128xf32>
    %c0_24 = arith.constant 0 : index
    %37 = arith.index_cast %33 : i32 to index
    %c0_25 = arith.constant 0 : index
    %38 = vector.load %arg6[%c0_24, %37, %c0_25] : memref<1x24x128xf32, #tpu.memory_space<vmem>>, vector<1x8x128xf32>
    tpu.vector_store %arg6[%c0_24, %37, %c0_25], %36 {strides = array<i32>} : memref<1x24x128xf32, #tpu.memory_space<vmem>>, vector<1x8x128xf32>,
    %c0_26 = arith.constant 0 : index
    %c2 = arith.constant 2 : index
    %c0_27 = arith.constant 0 : index
    %c0_28 = arith.constant 0 : index
    %39 = vector.load %arg2[%c0_26, %c2, %c0_27, %c0_28] : memref<1x4x8x128xbf16, #tpu.memory_space<vmem>>, vector<1x1x8x128xbf16>
    %40 = vector.shape_cast %39 : vector<1x1x8x128xbf16> to vector<1x8x128xbf16>
    %41 = vector.shape_cast %40 : vector<1x8x128xbf16> to vector<8x128xbf16>
    %c2_29 = arith.constant 2 : index
    %c0_30 = arith.constant 0 : index
    %c0_31 = arith.constant 0 : index
    %42 = vector.load %arg3[%c2_29, %c0_30, %c0_31] : memref<4x128x256xbf16, #tpu.memory_space<vmem>>, vector<1x128x256xbf16>
    %43 = vector.shape_cast %42 : vector<1x128x256xbf16> to vector<128x256xbf16>
    %cst_32 = arith.constant dense<0.000000e+00> : vector<8x256xf32>
    %44 = tpu.matmul %41, %43, %cst_32 {dimension_numbers = #tpu.dot_dimension_numbers<[1], [0], [0], [1], [0, 0, 1, 1], [], []>} : vector<8x128xbf16>, vector<128x256xbf16>, vector<8x256xf32> -> vector<8x256xf32>
    %45 = vector.extract_strided_slice %44 {offsets = [0, 0], sizes = [8, 128], strides = [1, 1]} : vector<8x256xf32> to vector<8x128xf32>
    %46 = vector.shape_cast %45 : vector<8x128xf32> to vector<1x8x128xf32>
    %c0_33 = arith.constant 0 : index
    %47 = arith.index_cast %4 : i32 to index
    %c0_34 = arith.constant 0 : index
    %48 = vector.load %arg6[%c0_33, %47, %c0_34] : memref<1x24x128xf32, #tpu.memory_space<vmem>>, vector<1x8x128xf32>
    %49 = arith.addf %48, %46 : vector<1x8x128xf32>
    %c0_35 = arith.constant 0 : index
    %50 = arith.index_cast %4 : i32 to index
    %c0_36 = arith.constant 0 : index
    %51 = vector.load %arg6[%c0_35, %50, %c0_36] : memref<1x24x128xf32, #tpu.memory_space<vmem>>, vector<1x8x128xf32>
    tpu.vector_store %arg6[%c0_35, %50, %c0_36], %49 {strides = array<i32>} : memref<1x24x128xf32, #tpu.memory_space<vmem>>, vector<1x8x128xf32>,
    %52 = vector.extract_strided_slice %44 {offsets = [0, 128], sizes = [8, 128], strides = [1, 1]} : vector<8x256xf32> to vector<8x128xf32>
    %53 = vector.shape_cast %52 : vector<8x128xf32> to vector<1x8x128xf32>
    %c1_i32_37 = arith.constant 1 : i32
    %54 = arith.addi %4, %c1_i32_37 : i32
    %c0_38 = arith.constant 0 : index
    %55 = arith.index_cast %54 : i32 to index
    %c0_39 = arith.constant 0 : index
    %56 = vector.load %arg6[%c0_38, %55, %c0_39] : memref<1x24x128xf32, #tpu.memory_space<vmem>>, vector<1x8x128xf32>
    %57 = arith.addf %56, %53 : vector<1x8x128xf32>
    %c0_40 = arith.constant 0 : index
    %58 = arith.index_cast %54 : i32 to index
    %c0_41 = arith.constant 0 : index
    %59 = vector.load %arg6[%c0_40, %58, %c0_41] : memref<1x24x128xf32, #tpu.memory_space<vmem>>, vector<1x8x128xf32>
    tpu.vector_store %arg6[%c0_40, %58, %c0_41], %57 {strides = array<i32>} : memref<1x24x128xf32, #tpu.memory_space<vmem>>, vector<1x8x128xf32>,
    %c0_42 = arith.constant 0 : index
    %c3 = arith.constant 3 : index
    %c0_43 = arith.constant 0 : index
    %c0_44 = arith.constant 0 : index
    %60 = vector.load %arg2[%c0_42, %c3, %c0_43, %c0_44] : memref<1x4x8x128xbf16, #tpu.memory_space<vmem>>, vector<1x1x8x128xbf16>
    %61 = vector.shape_cast %60 : vector<1x1x8x128xbf16> to vector<1x8x128xbf16>
    %62 = vector.shape_cast %61 : vector<1x8x128xbf16> to vector<8x128xbf16>
    %c3_45 = arith.constant 3 : index
    %c0_46 = arith.constant 0 : index
    %c0_47 = arith.constant 0 : index
    %63 = vector.load %arg3[%c3_45, %c0_46, %c0_47] : memref<4x128x256xbf16, #tpu.memory_space<vmem>>, vector<1x128x256xbf16>
    %64 = vector.shape_cast %63 : vector<1x128x256xbf16> to vector<128x256xbf16>
    %cst_48 = arith.constant dense<0.000000e+00> : vector<8x256xf32>
    %65 = tpu.matmul %62, %64, %cst_48 {dimension_numbers = #tpu.dot_dimension_numbers<[1], [0], [0], [1], [0, 0, 1, 1], [], []>} : vector<8x128xbf16>, vector<128x256xbf16>, vector<8x256xf32> -> vector<8x256xf32>
    %66 = vector.extract_strided_slice %65 {offsets = [0, 0], sizes = [8, 128], strides = [1, 1]} : vector<8x256xf32> to vector<8x128xf32>
    %67 = vector.shape_cast %66 : vector<8x128xf32> to vector<1x8x128xf32>
    %c0_49 = arith.constant 0 : index
    %68 = arith.index_cast %4 : i32 to index
    %c0_50 = arith.constant 0 : index
    %69 = vector.load %arg6[%c0_49, %68, %c0_50] : memref<1x24x128xf32, #tpu.memory_space<vmem>>, vector<1x8x128xf32>
    %70 = arith.addf %69, %67 : vector<1x8x128xf32>
    %c0_51 = arith.constant 0 : index
    %71 = arith.index_cast %4 : i32 to index
    %c0_52 = arith.constant 0 : index
    %72 = vector.load %arg6[%c0_51, %71, %c0_52] : memref<1x24x128xf32, #tpu.memory_space<vmem>>, vector<1x8x128xf32>
    tpu.vector_store %arg6[%c0_51, %71, %c0_52], %70 {strides = array<i32>} : memref<1x24x128xf32, #tpu.memory_space<vmem>>, vector<1x8x128xf32>,
    %73 = vector.extract_strided_slice %65 {offsets = [0, 128], sizes = [8, 128], strides = [1, 1]} : vector<8x256xf32> to vector<8x128xf32>
    %74 = vector.shape_cast %73 : vector<8x128xf32> to vector<1x8x128xf32>
    %c1_i32_53 = arith.constant 1 : i32
    %75 = arith.addi %4, %c1_i32_53 : i32
    %c0_54 = arith.constant 0 : index
    %76 = arith.index_cast %75 : i32 to index
    %c0_55 = arith.constant 0 : index
    %77 = vector.load %arg6[%c0_54, %76, %c0_55] : memref<1x24x128xf32, #tpu.memory_space<vmem>>, vector<1x8x128xf32>
    %78 = arith.addf %77, %74 : vector<1x8x128xf32>
    %c0_56 = arith.constant 0 : index
    %79 = arith.index_cast %75 : i32 to index
    %c0_57 = arith.constant 0 : index
    %80 = vector.load %arg6[%c0_56, %79, %c0_57] : memref<1x24x128xf32, #tpu.memory_space<vmem>>, vector<1x8x128xf32>
    tpu.vector_store %arg6[%c0_56, %79, %c0_57], %78 {strides = array<i32>} : memref<1x24x128xf32, #tpu.memory_space<vmem>>, vector<1x8x128xf32>,
    %c0_i32_58 = arith.constant 0 : i32
    %81 = arith.cmpi sgt, %arg1, %c0_i32_58 : i32
    %82 = arith.extui %81 : i1 to i32
    %c0_i32_59 = arith.constant 0 : i32
    %83 = arith.cmpi ne, %82, %c0_i32_59 : i32
    scf.if %83 {
      %c1_i32_60 = arith.constant 1 : i32
      %84 = arith.subi %arg1, %c1_i32_60 : i32
      %c8_i32_61 = arith.constant 8 : i32
      %85 = arith.muli %84, %c8_i32_61 : i32
      %86 = tpu.assume_multiple %85, 8 : i32
      %c0_62 = arith.constant 0 : index
      %87 = arith.index_cast %86 : i32 to index
      %c0_63 = arith.constant 0 : index
      %88 = vector.load %arg6[%c0_62, %87, %c0_63] : memref<1x24x128xf32, #tpu.memory_space<vmem>>, vector<1x8x128xf32>
      %c0_64 = arith.constant 0 : index
      %c0_65 = arith.constant 0 : index
      %c0_66 = arith.constant 0 : index
      %89 = vector.load %arg4[%c0_64, %c0_65, %c0_66] : memref<1x8x128xf32, #tpu.memory_space<vmem>>, vector<1x8x128xf32>
      %90 = arith.mulf %88, %89 : vector<1x8x128xf32>
      %c0_67 = arith.constant 0 : index
      %c0_68 = arith.constant 0 : index
      %c0_69 = arith.constant 0 : index
      %91 = vector.load %arg5[%c0_67, %c0_68, %c0_69] : memref<1x8x128xf32, #tpu.memory_space<vmem>>, vector<1x8x128xf32>
      tpu.vector_store %arg5[%c0_67, %c0_68, %c0_69], %90 {strides = array<i32>} : memref<1x8x128xf32, #tpu.memory_space<vmem>>, vector<1x8x128xf32>,
    } else {
    }
    return
  }
  func.func @transform_0(%arg0: i32, %arg1: i32) -> (i32, i32, i32, i32) {
    %c0_i32 = arith.constant 0 : i32
    %c0_i32_0 = arith.constant 0 : i32
    %c0_i32_1 = arith.constant 0 : i32
    return %arg0, %arg1, %c0_i32, %c0_i32_0 : i32, i32, i32, i32
  }
  func.func @transform_1(%arg0: i32, %arg1: i32) -> (i32, i32, i32) {
    %c0_i32 = arith.constant 0 : i32
    %c0_i32_0 = arith.constant 0 : i32
    %c0_i32_1 = arith.constant 0 : i32
    %c0_i32_2 = arith.constant 0 : i32
    return %c0_i32, %c0_i32_0, %c0_i32_1 : i32, i32, i32
  }
  func.func @transform_2(%arg0: i32, %arg1: i32) -> (i32, i32, i32) {
    %c0_i32 = arith.constant 0 : i32
    %c0_i32_0 = arith.constant 0 : i32
    %c0_i32_1 = arith.constant 0 : i32
    return %c0_i32, %arg1, %c0_i32_0 : i32, i32, i32
  }
  func.func @transform_3(%arg0: i32, %arg1: i32) -> (i32, i32, i32) {
    %c0_i32 = arith.constant 0 : i32
    %c0_i32_0 = arith.constant 0 : i32
    return %arg0, %arg1, %c0_i32 : i32, i32, i32
  }
}

</mosaic_0001>

<bundles_post_ra>
// kernel: tpu_custom_call.1
= control target key start
LH: loop header
LB: loop body
LE: loop exit
PB: predicated region body
PF: predicated region fallthrough
CT: control target
= control target key end

     0   :  { %s1863_s0 = inlined_call_operand.hbm [shape: bf16[2,8,8,128], index: 0, kind: input, shape index: {}]   ;;  %s1864_s1 = inlined_call_operand.hbm [shape: bf16[4,128,256], index: 1, kind: input, shape index: {}]   ;;  %s1865_s2 = inlined_call_operand.hbm [shape: f32[1,16,128], index: 2, kind: input, shape index: {}]   ;;  %s1866_s3 = inlined_call_operand.hbm [shape: f32[2,16,128], index: 3, kind: output, shape index: {}]  }
   0x1   :  { %1871 = sst [smem:[#allocation17_spill]] %s1863_s0 }
   0x2   :  { %1872 = sst [smem:[#allocation18_spill]] %s1866_s3 }
   0x3   :  { %8 = vsyncpa [#allocation4], 0 }
   0x4   :  { %10 = vsyncpa [#allocation4 + $0x1], 0 }
   0x5   :  { %11 = vsyncpa [#allocation7], 0 }
   0x6   :  { %12 = vsyncpa [#allocation5], 0 }
   0x7   :  { %14 = vsyncpa [#allocation5 + $0x1], 0  ;;  %s1587_s12 = smov 0   ;;  %s1589_s13 = smov 0  }
   0x8   :  { %s1591_s14 = smov 0   ;;  %s1593_s15 = smov 0  }
   0x9   :  { %s1595_s16 = smov 0   ;;  %s1597_s17 = smov 0  }
   0xa   :  { %s1599_s18 = smov 0   ;;  %s1601_s19 = smov 0  }
   0xb   :  { %s1603_s20 = smov 0   ;;  %s1605_s21 = smov 0  }
   0xc   :  { %s1607_s22 = smov 0  }
   0xd LB: > { %s901_s23 = sadd.s32 4294967294, %s1559_s22   ;;  %s29_s24 = sadd.s32 1, %s1551_s20  ;;  %s1559_s22 = sphi %s1607_s22, %s20_s22   ;;  %s1555_s21 = sphi %s1605_s21, %s1896_s21   ;;  %s1551_s20 = sphi %s1603_s20, %s1895_s20   ;;  %s1547_s19 = sphi %s1601_s19, %s1894_s19   ;;  %s1543_s18 = sphi %s1599_s18, %s1893_s18   ;;  %s1539_s17 = sphi %s1597_s17, %s1892_s17   ;;  %s1535_s16 = sphi %s1595_s16, %s1891_s16   ;;  %s1531_s15 = sphi %s1593_s15, %s1890_s15   ;;  %s1527_s14 = sphi %s1591_s14, %s1889_s14   ;;  %s1523_s13 = sphi %s1589_s13, %s1888_s13   ;;  %s1519_s12 = sphi %s1587_s12, %s1887_s12  }
   0xe   : > { %p30_p0 = scmp.ge.s32.totalorder %s29_s24, 2  ;;  %s32_s25 = sadd.s32 1, %s1555_s21 }
   0xf   : > { %s41_s26 = sadd.s32 1, %s1539_s17  ;;  %p48_p1 = scmp.ne.s32.totalorder %s1539_s17, %s1535_s16 }
  0x10   : > { %s1898_s24 = smov (%p30_p0, %s29_s24), 0  ;;  %s1900_s25 = smov (!%p30_p0, %s32_s25), %s1555_s21 }
  0x11   : > { %1873 = sst [smem:[#allocation14_spill]] %s1898_s24  ;;  %s1653_s27 = ssub.s32 %s1551_s20, %s1898_s24 }
  0x12   : > { %p49_p2 = scmp.eq.s32.totalorder %s1559_s22, 0  ;;  %p34_p3 = scmp.ge.s32.totalorder %s1900_s25, 2 }
  0x13   : > { %p54_p4 = scmp.ne.s32.totalorder %s1535_s16, %s1531_s15  ;;  %p133_p6 = scmp.eq.s32.totalorder %s901_s23, 3 }
  0x14   : > { %p1663_p5 = por %p49_p2, %p48_p1  ;;  %s1902_s25 = smov (%p34_p3, %s1900_s25), 0 }
  0x15   : > { %1875 = sst [smem:[#allocation15_spill]] %s1902_s25  ;;  %p1672_p7 = por %p133_p6, %p54_p4 }
  0x16   : > { %s36_s30 = ssub.s32 %s1555_s21, %s1902_s25  ;;  %p1242_p8 = scmp.lt.s32.totalorder %s1559_s22, 4 }
  0x17   : > { %s1876_s29 = scalar_select %p1672_p7, 1, 0 }
  0x18   : > { %s38_s4 = sor.u32 %s1653_s27, %s36_s30  ;;  %s167_s5 = sand.u32 1, %s1559_s22  }
  0x19   : > { %1877 = sst [smem:[#allocation16_spill]] %s1876_s29  ;;  %p39_p9 = scmp.eq.s32.totalorder %s38_s4, 0 }
  0x1a   : > { %s169_s6 = sand.u32 1, %s1539_s17   ;;  %s906_s7 = sshll.u32 %s1551_s20, 2 }
  0x1b   : > { %s1684_s8 = scalar_select %p39_p9, %s1539_s17, %s41_s26  }
  0x1c   : > { %s905_s9 = sshll.u32 %s169_s6, 4  ;;  %s907_s10 = sshll.u32 %s1555_s21, 3 }
  0x1d   : > { %s176_s11 = sadd.s32 %s907_s10, %s906_s7  ;;  %s171_s24 = scalar_lea.vmem [#allocation3], %s905_s9 }
  0x1e   : > { %s908_s23 = sshll.u32 %s176_s11, 2  ;;  %s181_s25 = sshll.u32 %s171_s24, 4  ;;  %s182_s25 = int_to_ptr.vmem [resolvable:$true] %s181_s25 }
  0x1f   : > { %s1878_s0 = sld [smem:[#allocation17_spill]]  ;;  %p1231_p10 = pnand %p1242_p8, %p1663_p5 }
  0x20   : > { %s1694_s4 = scalar_lea.sflag [#allocation4], %s167_s5  ;;  %s1561_s6 = smov 64  }
  0x21   : > { %s1562_s7 = smov 4   ;;  %s1698_s9 = sadd.s32 4294967295, %s1559_s22  }
  0x22   : > { %p902_p11 = scmp.ge.s32.totalorder %s1559_s22, 1  ;;  %p55_p12 = scmp.eq.s32.totalorder %s1698_s9, 0 }
  0x23   : > { %p127_p13 = scmp.eq.s32.totalorder %s1698_s9, 3  ;;  %p140_p0 = scmp.lt.s32.totalorder %s1559_s22, 5 }
  0x24   : > { %p1709_p3 = por %p55_p12, %p54_p4  ;;  %s151_s5 = sshll.u32 %s1864_s1, 4  ;;  %s152_s5 = int_to_ptr.hbm [resolvable:$true] %s151_s5 }
  0x25   : > { %s178_s30 = scalar_lea.hbm %s1878_s0, %s908_s23  ;;  %p1716_p5 = por %p127_p13, %p48_p1 }
  0x26   : > { %s179_s26 = sshll.u32 %s178_s30, 4  ;;  %p1720_p6 = pnand %p902_p11, %p140_p0  ;;  %s180_s26 = int_to_ptr.hbm [resolvable:$true] %s179_s26 }
  0x27   : > { %1233 = dma.hbm_to_vmem [thread:$0]  (!%p1231_p10), %s180_s26, 256, %s182_s25, %s1694_s4, %s1561_s6, %s1561_s6, %s1562_s7  }
  0x28   : > { %p1226_p1 = pneg %p1720_p6  ;;  %s1563_s10 = smov [#allocation6]  }
  0x29   : > { %s153_s11 = sshll.u32 %s1563_s10, 4  ;;  %s1564_s23 = smov 128   ;;  %s154_s11 = int_to_ptr.vmem [resolvable:$true] %s153_s11 }
  0x2a   : > { %p1227_p4 = pnand %p1226_p1, %p55_p12  ;;  %s1565_s30 = smov 8  }
  0x2b   : > { %p86_p9 = scmp.eq.s32.totalorder %s1653_s27, 0  ;;  %s88_s26 = sadd.s32 1, %s1527_s14 }
  0x2c   : > { %1229 = dma.hbm_to_vmem [thread:$0]  (!%p1227_p4), %s152_s5, 8192, %s154_s11, [#allocation7], %s1564_s23, %s1564_s23, %s1565_s30  }
  0x2d   : > { %p95_p10 = scmp.ne.s32.totalorder %s1527_s14, %s1523_s13  ;;  %p101_p13 = scmp.ne.s32.totalorder %s1523_s13, %s1519_s12 }
  0x2e   : > { %s1736_s6 = scalar_select %p86_p9, %s1527_s14, %s88_s26  }
  0x2f   : > { %p97_p11 = por %p95_p10, %p49_p2  ;;  %s193_s7 = sand.u32 1, %s1527_s14  }
  0x30   : > { %s910_s28 = sshll.u32 %s1551_s20, 3  ;;  %p1746_p0 = por %p101_p13, %p55_p12 }
  0x31   : > { %s909_s10 = sshll.u32 %s193_s7, 3  ;;  %s199_s27 = scalar_lea.hbm %s1865_s2, %s910_s28 }
  0x32   : > { %s201_s11 = sshll.u32 %s199_s27, 4  ;;  %s195_s23 = scalar_lea.vmem [#allocation8], %s909_s10  ;;  %s202_s11 = int_to_ptr.hbm [resolvable:$true] %s201_s11 }
  0x33   : > { %s203_s30 = sshll.u32 %s195_s23, 4  ;;  %p1234_p2 = pnand %p1242_p8, %p97_p11  ;;  %s204_s30 = int_to_ptr.vmem [resolvable:$true] %s203_s30 }
  0x34   : > { %212 = sbr.rel (%p1720_p6) target bundleno = 321 (0x141), region = 32  ;;  %s214_s12 = sand.u32 (!%p1720_p6), 1, %s1698_s9  }
  0x35   : > { %1236 = dma.hbm_to_vmem [thread:$0]  (!%p1234_p2), %s202_s11, 128, %s204_s30, %s1694_s4  }
  0x36   : > { %s1760_s26 = sand.u32 (!%p1720_p6), 1, %s1535_s16   ;;  %s215_s7 = scalar_lea.sflag (!%p1720_p6), [#allocation4], %s214_s12 }
  0x37   : > { %s912_s0 = sshll.u32 (!%p1720_p6), %s1760_s26, 4 }
  0x38   : > { %s1763_s28 = scalar_lea.vmem (!%p1720_p6), [#allocation3], %s912_s0 }
  0x39   : > { %1502 = dma.done.wait (%p1709_p3), %s215_s7, 256  }
  0x3a   : > { %1504 = vsyncadd (%p1709_p3), %s215_s7, 4294967040 }
  0x3b   : > { %1506 = dma.done.wait (%p55_p12), [#allocation7], 8192  }
  0x3c   : > { %1508 = vsyncadd (%p55_p12), [#allocation7], 4294959104  ;;  %s231_s4 = sand.u32 1, %s1523_s13  }
  0x3d   : > { %s1774_s25 = sshll.u32 %s231_s4, 3 }
  0x3e   : > { %s233_s10 = scalar_lea.vmem [#allocation8], %s1774_s25 }
  0x3f   : > { %1510 = dma.done.wait (%p1746_p0), %s215_s7, 128  }
  0x40   : > { %1512 = vsyncadd (%p1746_p0), %s215_s7, 4294967168  ;;  %s915_s3 = sshll.u32 %s1760_s26, 3  ;;  %p916_p8 = scmp.ne.s32.totalorder %s1543_s18, 0 }
  0x41   : > { %s1782_s5 = scalar_lea.vmem [#allocation9], %s915_s3 }
  0x42   : > { %266 = sbr.rel (%p916_p8) target bundleno = 75 (0x4b), region = 48 }
  0x47   : > { %v1566_v0 = vmov 0.0  }
  0x48   : > { %267 = vst [vmem:[#allocation2] sm:$0xff] %v1566_v0 }
  0x49   : > { %268 = vst [vmem:[#allocation2 + $0x8] sm:$0xff] %v1566_v0 }
  0x4a   : > { %269 = vst [vmem:[#allocation2 + $0x10] sm:$0xff] %v1566_v0 }
  0x4b PF: > { %v948_v1 = vld [vmem:[#allocation6 + $0x70] sm:$0xf]  ;;  %v1167_v2 = vld [vmem:[#allocation6 + $0x74] sm:$0xf0]  ;;  %v944_v6 = vld [vmem:[#allocation6 + $0x60] sm:$0xf] }
  0x4c   : > { %v1009_v3 = vld [vmem:[#allocation6 + $0xf0] sm:$0xf]  ;;  %v949_v4 = vor.u32 %v1167_v2, %v948_v1  ;;  %v1183_v5 = vld [vmem:[#allocation6 + $0xf4] sm:$0xf0]  ;;  %v1166_v7 = vld [vmem:[#allocation6 + $0x64] sm:$0xf0] }
  0x4d   : > { %v1010_v8 = vor.u32 %v1183_v5, %v1009_v3  ;;  %v1001_v9 = vld [vmem:[#allocation6 + $0xe0] sm:$0xf]  ;;  %v1181_v10 = vld [vmem:[#allocation6 + $0xe4] sm:$0xf0]  ;;  %v1182_v11 = vld [vmem:[#allocation6 + $0xf4] sm:$0xf]  ;;  %v945_v12 = vor.u32 %v1166_v7, %v944_v6 }
  0x4e   : > { %336 = vmatpush.bf16.msra.mxu0 %v949_v4  ;;  %v1011_v13 = vld [vmem:[#allocation6 + $0xf8] sm:$0xf0]  ;;  %v1002_v14 = vor.u32 %v1181_v10, %v1001_v9  ;;  %v940_v16 = vld [vmem:[#allocation6 + $0x50] sm:$0xf]  ;;  %v1165_v17 = vld [vmem:[#allocation6 + $0x54] sm:$0xf0] }
  0x4f   : > { %452 = vmatpush.bf16.msra.mxu1 %v1010_v8  ;;  %v1014_v15 = vor.u32 %v1182_v11, %v1011_v13  ;;  %v1180_v18 = vld [vmem:[#allocation6 + $0xe4] sm:$0xf]  ;;  %v993_v19 = vld [vmem:[#allocation6 + $0xd0] sm:$0xf]  ;;  %v1179_v20 = vld [vmem:[#allocation6 + $0xd4] sm:$0xf0]  ;;  %v941_v23 = vor.u32 %v1165_v17, %v940_v16 }
  0x50   : > { %v1003_v21 = vld [vmem:[#allocation6 + $0xe8] sm:$0xf0]  ;;  %v936_v24 = vld [vmem:[#allocation6 + $0x40] sm:$0xf]  ;;  %v1178_v25 = vld [vmem:[#allocation6 + $0xd4] sm:$0xf]  ;;  %v994_v27 = vor.u32 %v1179_v20, %v993_v19 }
  0x51   : > { %465 = vmatpush.bf16.msra.mxu2 %v1014_v15  ;;  %v1006_v22 = vor.u32 %v1180_v18, %v1003_v21  ;;  %v995_v26 = vld [vmem:[#allocation6 + $0xd8] sm:$0xf0]  ;;  %v1164_v28 = vld [vmem:[#allocation6 + $0x44] sm:$0xf0]  ;;  %v1077_v29 = vld [vmem:[#allocation6 + $0x170] sm:$0xf] }
  0x52   : > { %337 = vmatpush.bf16.msra.mxu0 %v945_v12  ;;  %v1199_v30 = vld [vmem:[#allocation6 + $0x174] sm:$0xf0]  ;;  %v985_v31 = vld [vmem:[#allocation6 + $0xc0] sm:$0xf]  ;;  %v1177_v32 = vld [vmem:[#allocation6 + $0xc4] sm:$0xf0]  ;;  %v998_v34 = vor.u32 %v1178_v25, %v995_v26  ;;  %v937_v36 = vor.u32 %v1164_v28, %v936_v24 }
  0x53   : > { %453 = vmatpush.bf16.msra.mxu1 %v1002_v14  ;;  %v1078_v33 = vor.u32 %v1199_v30, %v1077_v29  ;;  %v1069_v35 = vld [vmem:[#allocation6 + $0x160] sm:$0xf]  ;;  %v1176_v37 = vld [vmem:[#allocation6 + $0xc4] sm:$0xf]  ;;  %v987_v38 = vld [vmem:[#allocation6 + $0xc8] sm:$0xf0]  ;;  %v986_v40 = vor.u32 %v1177_v32, %v985_v31 }
  0x54   : > { %v1197_v39 = vld [vmem:[#allocation6 + $0x164] sm:$0xf0]  ;;  %v932_v41 = vld [vmem:[#allocation6 + $0x30] sm:$0xf]  ;;  %v1163_v42 = vld [vmem:[#allocation6 + $0x34] sm:$0xf0]  ;;  %v990_v48 = vor.u32 %v1176_v37, %v987_v38 }
  0x55   : > { %466 = vmatpush.bf16.msra.mxu2 %v1006_v22  ;;  %585 = vmatpush.bf16.msra.mxu3 %v1078_v33  ;;  %v977_v43 = vld [vmem:[#allocation6 + $0xb0] sm:$0xf]  ;;  %v1070_v44 = vor.u32 %v1197_v39, %v1069_v35  ;;  %v1175_v45 = vld [vmem:[#allocation6 + $0xb4] sm:$0xf0]  ;;  %v933_v49 = vor.u32 %v1163_v42, %v932_v41  ;;  %v928_v50 = vld [vmem:[#allocation6 + $0x20] sm:$0xf] }
  0x56   : > { %338 = vmatpush.bf16.msra.mxu0 %v941_v23  ;;  %v1061_v46 = vld [vmem:[#allocation6 + $0x150] sm:$0xf]  ;;  %v1195_v47 = vld [vmem:[#allocation6 + $0x154] sm:$0xf0]  ;;  %v1174_v51 = vld [vmem:[#allocation6 + $0xb4] sm:$0xf]  ;;  %v978_v54 = vor.u32 %v1175_v45, %v977_v43 }
  0x57   : > { %454 = vmatpush.bf16.msra.mxu1 %v994_v27  ;;  %v979_v52 = vld [vmem:[#allocation6 + $0xb8] sm:$0xf0]  ;;  %v1062_v53 = vor.u32 %v1195_v47, %v1061_v46  ;;  %v1162_v55 = vld [vmem:[#allocation6 + $0x24] sm:$0xf0]  ;;  %v1053_v56 = vld [vmem:[#allocation6 + $0x140] sm:$0xf] }
  0x58   : > { %v1193_v57 = vld [vmem:[#allocation6 + $0x144] sm:$0xf0]  ;;  %v969_v58 = vld [vmem:[#allocation6 + $0xa0] sm:$0xf]  ;;  %v982_v60 = vor.u32 %v1174_v51, %v979_v52  ;;  %v929_v61 = vor.u32 %v1162_v55, %v928_v50  ;;  %v924_v62 = vld [vmem:[#allocation6 + $0x10] sm:$0xf] }
  0x59   : > { %467 = vmatpush.bf16.msra.mxu2 %v998_v34  ;;  %586 = vmatpush.bf16.msra.mxu3 %v1070_v44  ;;  %v1173_v59 = vld [vmem:[#allocation6 + $0xa4] sm:$0xf0]  ;;  %v1172_v63 = vld [vmem:[#allocation6 + $0xa4] sm:$0xf]  ;;  %v971_v0 = vld [vmem:[#allocation6 + $0xa8] sm:$0xf0]  ;;  %v1054_v1 = vor.u32 %v1193_v57, %v1053_v56 }
  0x5a   : > { %339 = vmatpush.bf16.msra.mxu0 %v937_v36  ;;  %v970_v2 = vor.u32 %v1173_v59, %v969_v58  ;;  %v1161_v3 = vld [vmem:[#allocation6 + $0x14] sm:$0xf0]  ;;  %v1045_v4 = vld [vmem:[#allocation6 + $0x130] sm:$0xf]  ;;  %v974_v8 = vor.u32 %v1172_v63, %v971_v0  ;;  %v920_v9 = vld [vmem:[#allocation6] sm:$0xf] }
  0x5b   : > { %455 = vmatpush.bf16.msra.mxu1 %v986_v40  ;;  %v1191_v5 = vld [vmem:[#allocation6 + $0x134] sm:$0xf0]  ;;  %v961_v6 = vld [vmem:[#allocation6 + $0x90] sm:$0xf]  ;;  %v925_v10 = vor.u32 %v1161_v3, %v924_v62  ;;  %v1160_v11 = vld [vmem:[#allocation6 + $0x4] sm:$0xf0] }
  0x5c   : > { %v1171_v7 = vld [vmem:[#allocation6 + $0x94] sm:$0xf0]  ;;  %v1170_v12 = vld [vmem:[#allocation6 + $0x94] sm:$0xf]  ;;  %v963_v13 = vld [vmem:[#allocation6 + $0x98] sm:$0xf0]  ;;  %v1046_v14 = vor.u32 %v1191_v5, %v1045_v4  ;;  %v921_v25 = vor.u32 %v1160_v11, %v920_v9 }
  0x5d   : > { %468 = vmatpush.bf16.msra.mxu2 %v990_v48  ;;  %587 = vmatpush.bf16.msra.mxu3 %v1062_v53  ;;  %v962_v15 = vor.u32 %v1171_v7, %v961_v6  ;;  %v953_v16 = vld [vmem:[#allocation6 + $0x80] sm:$0xf]  ;;  %v1189_v18 = vld [vmem:[#allocation6 + $0x124] sm:$0xf0]  ;;  %v1198_v20 = vld [vmem:[#allocation6 + $0x174] sm:$0xf]  ;;  %v966_v22 = vor.u32 %v1170_v12, %v963_v13 }
  0x5e   : > { %340 = vmatpush.bf16.msra.mxu0 %v933_v49  ;;  %v1037_v17 = vld [vmem:[#allocation6 + $0x120] sm:$0xf]  ;;  %v1169_v19 = vld [vmem:[#allocation6 + $0x84] sm:$0xf0]  ;;  %v1079_v21 = vld [vmem:[#allocation6 + $0x178] sm:$0xf0] }
  0x5f   : > { %456 = vmatpush.bf16.msra.mxu1 %v978_v54  ;;  %v1144_v23 = vld [vmem:[#allocation6 + $0x1f0] sm:$0xf]  ;;  %v1215_v24 = vld [vmem:[#allocation6 + $0x1f4] sm:$0xf0]  ;;  %v1168_v26 = vld [vmem:[#allocation6 + $0x84] sm:$0xf]  ;;  %v1038_v28 = vor.u32 %v1189_v18, %v1037_v17  ;;  %v954_v29 = vor.u32 %v1169_v19, %v953_v16  ;;  %v1082_v30 = vor.u32 %v1198_v20, %v1079_v21 }
  0x60   : > { %v955_v27 = vld [vmem:[#allocation6 + $0x88] sm:$0xf0]  ;;  %v1196_v31 = vld [vmem:[#allocation6 + $0x164] sm:$0xf]  ;;  %v1029_v32 = vld [vmem:[#allocation6 + $0x110] sm:$0xf]  ;;  %v1145_v37 = vor.u32 %v1215_v24, %v1144_v23 }
  0x61   : > { %469 = vmatpush.bf16.msra.mxu2 %v982_v60  ;;  %588 = vmatpush.bf16.msra.mxu3 %v1054_v1  ;;  %v1187_v33 = vld [vmem:[#allocation6 + $0x114] sm:$0xf0]  ;;  %v1071_v34 = vld [vmem:[#allocation6 + $0x168] sm:$0xf0]  ;;  %v1214_v35 = vld [vmem:[#allocation6 + $0x1f4] sm:$0xf]  ;;  %v958_v38 = vor.u32 %v1168_v26, %v955_v27 }
  0x62   : > { %341 = vmatpush.bf16.msra.mxu0 %v929_v61  ;;  %v1146_v36 = vld [vmem:[#allocation6 + $0x1f8] sm:$0xf0]  ;;  %v1136_v39 = vld [vmem:[#allocation6 + $0x1e0] sm:$0xf]  ;;  %v1213_v40 = vld [vmem:[#allocation6 + $0x1e4] sm:$0xf0]  ;;  %v1030_v43 = vor.u32 %v1187_v33, %v1029_v32  ;;  %v1074_v44 = vor.u32 %v1196_v31, %v1071_v34 }
  0x63   : > { %457 = vmatpush.bf16.msra.mxu1 %v970_v2  ;;  %v271_v41 = vld [vmem:[%s1763_s28] sm:$0xf]  ;;  %v950_v42 = vld [vmem:[%s1763_s28 + $0x4] sm:$0xf]  ;;  %v1149_v46 = vor.u32 %v1214_v35, %v1146_v36  ;;  %v1185_v48 = vld [vmem:[#allocation6 + $0x104] sm:$0xf0]  ;;  %v1137_v52 = vor.u32 %v1213_v40, %v1136_v39 }
  0x64   : > { %v1194_v45 = vld [vmem:[#allocation6 + $0x154] sm:$0xf]  ;;  %v1021_v47 = vld [vmem:[#allocation6 + $0x100] sm:$0xf]  ;;  %v1063_v49 = vld [vmem:[#allocation6 + $0x158] sm:$0xf0] }
  0x65   : > { %470 = vmatpush.bf16.msra.mxu2 %v974_v8  ;;  %589 = vmatpush.bf16.msra.mxu3 %v1046_v14  ;;  %v1212_v50 = vld [vmem:[#allocation6 + $0x1e4] sm:$0xf]  ;;  %v1138_v51 = vld [vmem:[#allocation6 + $0x1e8] sm:$0xf0]  ;;  %v1128_v53 = vld [vmem:[#allocation6 + $0x1d0] sm:$0xf]  ;;  %v1022_v55 = vor.u32 %v1185_v48, %v1021_v47  ;;  %v1066_v56 = vor.u32 %v1194_v45, %v1063_v49 }
  0x66   : > { %342 = vmatpush.bf16.msra.mxu0 %v925_v10  ;;  %v1211_v54 = vld [vmem:[#allocation6 + $0x1d4] sm:$0xf0]  ;;  %v1192_v57 = vld [vmem:[#allocation6 + $0x144] sm:$0xf]  ;;  %v1141_v58 = vor.u32 %v1212_v50, %v1138_v51  ;;  %v1055_v59 = vld [vmem:[#allocation6 + $0x148] sm:$0xf0] }
  0x67   : > { %458 = vmatpush.bf16.msra.mxu1 %v962_v15  ;;  %v1210_v60 = vld [vmem:[#allocation6 + $0x1d4] sm:$0xf]  ;;  %v1130_v61 = vld [vmem:[#allocation6 + $0x1d8] sm:$0xf0]  ;;  %v1129_v62 = vor.u32 %v1211_v54, %v1128_v53  ;;  %v1120_v63 = vld [vmem:[#allocation6 + $0x1c0] sm:$0xf]  ;;  %v1058_v2 = vor.u32 %v1192_v57, %v1055_v59 }
  0x68   : > { %v1209_v0 = vld [vmem:[#allocation6 + $0x1c4] sm:$0xf0]  ;;  %v1190_v3 = vld [vmem:[#allocation6 + $0x134] sm:$0xf]  ;;  %v1133_v4 = vor.u32 %v1210_v60, %v1130_v61  ;;  %v1047_v5 = vld [vmem:[#allocation6 + $0x138] sm:$0xf0] }
  0x69   : > { %471 = vmatpush.bf16.msra.mxu2 %v966_v22  ;;  %590 = vmatpush.bf16.msra.mxu3 %v1038_v28  ;;  %v1018_v1 = vld [vmem:[%s1763_s28 + $0x8] sm:$0xf]  ;;  %v1208_v6 = vld [vmem:[#allocation6 + $0x1c4] sm:$0xf]  ;;  %v1122_v7 = vld [vmem:[#allocation6 + $0x1c8] sm:$0xf0]  ;;  %v1121_v8 = vor.u32 %v1209_v0, %v1120_v63  ;;  %v1050_v11 = vor.u32 %v1190_v3, %v1047_v5 }
  0x6a   : > { %343 = vmatpush.bf16.msra.mxu0 %v921_v25  ;;  %v1112_v9 = vld [vmem:[#allocation6 + $0x1b0] sm:$0xf]  ;;  %v1207_v10 = vld [vmem:[#allocation6 + $0x1b4] sm:$0xf0]  ;;  %v1188_v12 = vld [vmem:[#allocation6 + $0x124] sm:$0xf]  ;;  %v1125_v13 = vor.u32 %v1208_v6, %v1122_v7 }
  0x6b   : > { %459 = vmatpush.bf16.msra.mxu1 %v954_v29  ;;  %v1039_v14 = vld [vmem:[#allocation6 + $0x128] sm:$0xf0]  ;;  %v1206_v15 = vld [vmem:[#allocation6 + $0x1b4] sm:$0xf]  ;;  %v1114_v16 = vld [vmem:[#allocation6 + $0x1b8] sm:$0xf0]  ;;  %v1113_v17 = vor.u32 %v1207_v10, %v1112_v9 }
  0x6c   : > { %v1104_v18 = vld [vmem:[#allocation6 + $0x1a0] sm:$0xf]  ;;  %v1205_v19 = vld [vmem:[#allocation6 + $0x1a4] sm:$0xf0]  ;;  %v1042_v20 = vor.u32 %v1188_v12, %v1039_v14  ;;  %v1186_v21 = vld [vmem:[#allocation6 + $0x114] sm:$0xf]  ;;  %v1117_v22 = vor.u32 %v1206_v15, %v1114_v16 }
  0x6d   : > { %344 = vmatmul.bf16.vlgmr.msra.gmra.mxu0 %v271_v41  ;;  %472 = vmatpush.bf16.msra.mxu2 %v958_v38  ;;  %v1031_v23 = vld [vmem:[#allocation6 + $0x118] sm:$0xf0]  ;;  %v1204_v24 = vld [vmem:[#allocation6 + $0x1a4] sm:$0xf]  ;;  %v1106_v25 = vld [vmem:[#allocation6 + $0x1a8] sm:$0xf0]  ;;  %v1105_v26 = vor.u32 %v1205_v19, %v1104_v18 }
  0x6e   : > { %598 = vmatpush.bf16.msrb.mxu0 %v1082_v30  ;;  %460 = vmatmul.bf16.vlgmr.msra.gmra.mxu1 %v950_v42  ;;  %v1096_v27 = vld [vmem:[#allocation6 + $0x190] sm:$0xf]  ;;  %v1203_v28 = vld [vmem:[#allocation6 + $0x194] sm:$0xf0]  ;;  %v1034_v29 = vor.u32 %v1186_v21, %v1031_v23  ;;  %v1184_v30 = vld [vmem:[#allocation6 + $0x104] sm:$0xf]  ;;  %v1109_v31 = vor.u32 %v1204_v24, %v1106_v25 }
  0x6f   : > { %716 = vmatpush.bf16.msrb.mxu1 %v1145_v37  ;;  %591 = vmatpush.bf16.msra.mxu3 %v1030_v43  ;;  %v1023_v32 = vld [vmem:[#allocation6 + $0x108] sm:$0xf0]  ;;  %v1202_v33 = vld [vmem:[#allocation6 + $0x194] sm:$0xf]  ;;  %v1098_v34 = vld [vmem:[#allocation6 + $0x198] sm:$0xf0]  ;;  %v1097_v35 = vor.u32 %v1203_v28, %v1096_v27 }
  0x70   : > { %473 = vmatmul.bf16.vlgmr.msra.gmra.mxu2 %v950_v42  ;;  %v1088_v36 = vld [vmem:[#allocation6 + $0x180] sm:$0xf]  ;;  %v1201_v37 = vld [vmem:[#allocation6 + $0x184] sm:$0xf0]  ;;  %v1026_v38 = vor.u32 %v1184_v30, %v1023_v32  ;;  %v1101_v39 = vor.u32 %v1202_v33, %v1098_v34  ;;  %v1200_v40 = vld [vmem:[#allocation6 + $0x184] sm:$0xf] }
  0x71   : > { %729 = vmatpush.bf16.msrb.mxu2 %v1149_v46  ;;  %v1090_v41 = vld [vmem:[#allocation6 + $0x188] sm:$0xf0]  ;;  %v1089_v42 = vor.u32 %v1201_v37, %v1088_v36  ;;  %s917_s9 = sshll.u32 %s1543_s18, 3  ;;  %p1152_p12 = scmp.le.s32.totalorder %s1543_s18, 0 }
  0x72   : > { %599 = vmatpush.bf16.msrb.mxu0 %v1074_v44  ;;  %v1093_v43 = vor.u32 %v1200_v40, %v1090_v41  ;;  %v1085_v44 = vld [vmem:[%s1763_s28 + $0xc] sm:$0xf]  ;;  %s1790_s29 = scalar_lea.vmem [#allocation2], %s917_s9  ;;  %s1153_s27 = sadd.s32 (!%p1152_p12), 4294967295, %s1543_s18 }
  0x73   : > { %717 = vmatpush.bf16.msrb.mxu1 %v1137_v52  ;;  %592 = vmatpush.bf16.msra.mxu3 %v1022_v55  ;;  %v350_v45 = vld [vmem:[%s1790_s29] sm:$0xff]  ;;  %s1154_s11 = sshll.u32 (!%p1152_p12), %s1153_s27, 3 }
  0x74   : > { %s754_s23 = scalar_lea.vmem (!%p1152_p12), [#allocation2], %s1154_s11 }
  0x75   : > { %730 = vmatpush.bf16.msrb.mxu2 %v1141_v58 }
  0x76   : > { %600 = vmatpush.bf16.msrb.mxu0 %v1066_v56  ;;  %593 = vmatmul.bf16.vlgmr.msra.gmra.mxu3 %v1018_v1 }
  0x77   : > { %718 = vmatpush.bf16.msrb.mxu1 %v1129_v62 }
  0x79   : > { %731 = vmatpush.bf16.msrb.mxu2 %v1133_v4 }
  0x7a   : > { %601 = vmatpush.bf16.msrb.mxu0 %v1058_v2 }
  0x7b   : > { %719 = vmatpush.bf16.msrb.mxu1 %v1121_v8 }
  0x7d   : > { %732 = vmatpush.bf16.msrb.mxu2 %v1125_v13 }
  0x7e   : > { %602 = vmatpush.bf16.msrb.mxu0 %v1050_v11 }
  0x7f   : > { %720 = vmatpush.bf16.msrb.mxu1 %v1113_v17 }
  0x81   : > { %733 = vmatpush.bf16.msrb.mxu2 %v1117_v22 }
  0x82   : > { %603 = vmatpush.bf16.msrb.mxu0 %v1042_v20 }
  0x83   : > { %721 = vmatpush.bf16.msrb.mxu1 %v1105_v26 }
  0x85   : > { %734 = vmatpush.bf16.msrb.mxu2 %v1109_v31 }
  0x86   : > { %604 = vmatpush.bf16.msrb.mxu0 %v1034_v29 }
  0x87   : > { %722 = vmatpush.bf16.msrb.mxu1 %v1097_v35 }
  0x89   : > { %735 = vmatpush.bf16.msrb.mxu2 %v1101_v39 }
  0x8a   : > { %605 = vmatpush.bf16.msrb.mxu0 %v1026_v38 }
  0x8b   : > { %723 = vmatpush.bf16.msrb.mxu1 %v1089_v42 }
  0x8d   : > { %606 = vmatmul.bf16.vlgmr.msrb.gmra.mxu0 %v1018_v1  ;;  %736 = vmatpush.bf16.msrb.mxu2 %v1093_v43 }
  0x8e   : > { %724 = vmatmul.bf16.vlgmr.msrb.gmra.mxu1 %v1085_v44 }
  0x90   : > { %737 = vmatmul.bf16.vlgmr.msrb.gmra.mxu2 %v1085_v44 }
  0xea   : > { %v345_v46 = vpop.f32.mrf.mxu0 }
  0xeb   : > { %v351_v47 = vadd.f32 %v350_v45, %v345_v46  ;;  %v461_v48 = vpop.f32.mrf.mxu1 }
  0xed   : > { %v479_v49 = vadd.f32 %v461_v48, %v351_v47 }
  0xef   : > { %480 = vst [vmem:[%s1790_s29] sm:$0xff] %v479_v49 }
  0xf2   : > { %v347_v50 = vpop.f32.mrf.mxu0 }
  0xf3   : > { %v463_v51 = vpop.f32.mrf.mxu1  ;;  %v474_v52 = vpop.f32.mrf.mxu2 }
  0xf6   : > { %v1016_v53 = vld [vmem:[%s1790_s29 + $0x1] sm:$0xff] }
  0xf7   : > { %v484_v54 = vadd.f32 %v1016_v53, %v474_v52 }
  0xf9   : > { %v594_v55 = vpop.f32.mrf.mxu3  ;;  %1017 = vst [vmem:[%s1790_s29 + $0x1] sm:$0xff] %v484_v54 }
  0xfb   : > { %v476_v56 = vpop.f32.mrf.mxu2 }
 0x100   : > { %v611_v57 = vld [vmem:[%s1790_s29] sm:$0xff] }
 0x101   : > { %v596_v58 = vpop.f32.mrf.mxu3  ;;  %v612_v59 = vadd.f32 %v611_v57, %v594_v55 }
 0x103   : > { %613 = vst [vmem:[%s1790_s29] sm:$0xff] %v612_v59 }
 0x10a   : > { %v607_v60 = vpop.f32.mrf.mxu0  ;;  %v1083_v62 = vld [vmem:[%s1790_s29 + $0x1] sm:$0xff] }
 0x10b   : > { %v725_v61 = vpop.f32.mrf.mxu1  ;;  %v615_v63 = vadd.f32 %v1083_v62, %v607_v60 }
 0x10d   : > { %1084 = vst [vmem:[%s1790_s29 + $0x1] sm:$0xff] %v615_v63 }
 0x112   : > { %v609_v0 = vpop.f32.mrf.mxu0 }
 0x113   : > { %v727_v1 = vpop.f32.mrf.mxu1  ;;  %v738_v2 = vpop.f32.mrf.mxu2 }
 0x114   : > { %v742_v3 = vld [vmem:[%s1790_s29] sm:$0xff] }
 0x115   : > { %v743_v4 = vadd.f32 %v742_v3, %v725_v61 }
 0x117   : > { %744 = vst [vmem:[%s1790_s29] sm:$0xff] %v743_v4 }
 0x11b   : > { %v740_v5 = vpop.f32.mrf.mxu2 }
 0x11d   : > { %751 = sbr.rel (%p1152_p12) target bundleno = 300 (0x12c), region = 52 }
 0x11e   : > { %v1150_v6 = vld [vmem:[%s1790_s29 + $0x1] sm:$0xff] }
 0x11f   : > { %v746_v7 = vadd.f32 %v1150_v6, %v738_v2 }
 0x121   : > { %1151 = vst [vmem:[%s1790_s29 + $0x1] sm:$0xff] %v746_v7 }
 0x122   : > { %v756_v8 = vld [vmem:[%s233_s10] sm:$0xff] }
 0x128   : > { %v755_v9 = vld [vmem:[%s754_s23] sm:$0xff] }
 0x129   : > { %v757_v10 = vmul.f32 %v756_v8, %v755_v9 }
 0x12b   : > { %758 = vst [vmem:[%s1782_s5] sm:$0xff] %v757_v10 }
 0x12c PF: > { %s1156_s30 = sshll.u32 %s1547_s19, 1  ;;  %s774_s0 = sshll.u32 %s1782_s5, 4  ;;  %s775_s0 = int_to_ptr.vmem [resolvable:$true] %s774_s0 }
 0x12d   : > { %s770_s12 = sadd.s32 %s1543_s18, %s1156_s30  ;;  %s1883_s3 = sld [smem:[#allocation18_spill]] }
 0x12e   : > { %s1157_s7 = sshll.u32 %s770_s12, 3  ;;  %s760_s10 = scalar_lea.sflag [#allocation5], %s1760_s26 }
 0x133   : > { %s772_s9 = scalar_lea.hbm %s1883_s3, %s1157_s7  ;;  %s1449_s18 = scalar_lea.hbm %s1883_s3, 32 }
 0x134   : > { %s776_s25 = sshll.u32 %s772_s9, 4  ;;  %s777_s25 = int_to_ptr.hbm [resolvable:$true] %s776_s25 }
 0x135   : > { %s1443_s29 = sshra.s32 %s777_s25, 4  ;;  %s1444_s29 = int_to_ptr.hbm [resolvable:$true] %s1443_s29 }
 0x136   : > { %s1445_s27 = scalar_lea.hbm %s1444_s29, 8  ;;  %p1450_p4 = scmp.lt.s32.totalorder %s1444_s29, %s1883_s3 }
 0x137   : > { %p1446_p3 = scmp.ne.s32.totalorder %s1444_s29, %s1445_s27  ;;  %p1451_p9 = scmp.lt.s32.totalorder %s1449_s18, %s1445_s27 }
 0x139   : > { %p1447_p6 = pnand %p1446_p3, %p1716_p5  ;;  %p1452_p10 = por %p1451_p9, %p1450_p4 }
 0x13b   : > { %p1448_p1 = pneg %p1447_p6 }
 0x13d   : > { %p1453_p11 = pnand %p1452_p10, %p1448_p1 }
 0x13f   : > { %1456 = shalt.err (!%p1453_p11)
}
 0x140   : > { %1224 = dma.vmem_to_hbm [thread:$0]  (%p1716_p5), %s775_s0, 128, %s777_s25, %s760_s10  }
 0x141 PF: > { %p1244_p13 = scmp.ge.s32.totalorder %s1559_s22, 2  ;;  %s788_s30 = sand.u32 1, %s1531_s15  }
 0x142   : > { %s789_s12 = scalar_lea.sflag [#allocation5], %s788_s30 }
 0x143   : > { %p1238_p0 = pnand %p1244_p13, %p1672_p7 }
 0x145   : > { %p1239_p2 = pneg %p1238_p0 }
 0x147   : > { %1514 = dma.done.wait (%p1239_p2), %s789_s12, 128  }
 0x148   : > { %1516 = vsyncadd (%p1239_p2), %s789_s12, 4294967168  ;;  %s20_s22 = sadd.s32 1, %s1559_s22   ;;  %s1885_s24 = sld [smem:[#allocation14_spill]] }
 0x149   : > { %p17_p8 = scmp.ge.s32.totalorder %s20_s22, 6   ;;  %s1886_s0 = sld [smem:[#allocation15_spill]] }
 0x14a   : > { %s1887_s12 = smov %s1523_s13  ;;  %s1888_s13 = smov %s1527_s14 }
 0x14b   : > { %s1889_s14 = smov %s1736_s6  ;;  %s1890_s15 = smov %s1535_s16 }
 0x14c   : > { %s1891_s16 = smov %s1539_s17  ;;  %s1892_s17 = smov %s1684_s8 }
 0x14d   : > { %s1893_s18 = smov %s1551_s20  ;;  %s1894_s19 = smov %s1555_s21 }
 0x14e   : > { %s1895_s20 = smov %s1885_s24  ;;  %19 = sbr.rel (!%p17_p8) target bundleno = 13 (0xd), region = 109 }
 0x14f   : > { %s1896_s21 = smov %s1886_s0 }
 0x153   :  { %795 = vsyncpa [#allocation4], 1 }
 0x154   :  { %797 = vsyncpa [#allocation4 + $0x1], 1 }
 0x155   :  { %798 = vsyncpa [#allocation7], 1 }
 0x156   :  { %799 = vsyncpa [#allocation5], 1 }
 0x157   :  { %801 = vsyncpa [#allocation5 + $0x1], 1 }

</bundles_post_ra>
